<compile_context>
chip_gen: v7x
topology: tpu7x:2x2x1
jax: 0.10.0
libtpu: 0.0.40
codegen_flags: <defaults>
</compile_context>

<pallas_src>
import math

import jax
import jax.numpy as jnp
from jax import lax
from jax.experimental import pallas as pl
from jax.experimental.pallas import tpu as pltpu


# Explicit scoped-VMEM limit: well above v5e's 16 MiB default, comfortably below
# v7x's 64 MiB physical VMEM, and big enough that the HBM-bound kernel is past
# the block-size plateau (multi-MiB blocks) on every generation.
_VMEM_LIMIT = 48 * 1024 * 1024
_OUT_BLOCK_TARGET = 16 * 1024 * 1024   # aim for ~16 MiB of output per grid step
_WEIGHT_BUDGET = 4 * 1024 * 1024       # packed block-diagonal weight cap
_FLOPS_PER_BYTE_CAP = 120              # ~2x headroom under v5e's ~240 flop/byte roofline


def _round_up(x, m):
    return -(-x // m) * m


def _pick_group(w_sp, c_in, c_out, itemsize):
    """Pixel-group size G (pixels of one image row fused into one matmul).

    Preference order:
      * G == W : whole row per matmul -> one contiguous offset-0 store per
        output row and no lane slicing of the LHS at all.
      * else G | W with (G*2*C_out) % 128 == 0 (lane-dense aligned stores) and
        (G*C_in) % 128 == 0 (lane-aligned LHS slices).
    Subject to: packed-weight VMEM budget and a flop-inflation cap so the
    kernel never flips to MXU-bound on v5e.
    """
    bytes_per_pixel = itemsize * (c_in + 4 * c_out)
    best = (False, False, 1)                       # (store_aligned, lhs_aligned, g)
    for g in range(1, w_sp + 1):
        if w_sp % g:
            continue
        flops_per_pixel = 8 * g * c_in * c_out     # block-diag: 2*(g*C_in)*(4*C_out)/g
        if g > 1 and flops_per_pixel > _FLOPS_PER_BYTE_CAP * bytes_per_pixel:
            continue
        wb_bytes = itemsize * (g * c_in + 1) * (g * 4 * c_out)
        if g > 1 and wb_bytes > _WEIGHT_BUDGET:
            continue
        store_aligned = (g == w_sp) or (g * 2 * c_out) % 128 == 0
        lhs_aligned = (g == w_sp) or (g * c_in) % 128 == 0
        cand = (store_aligned, lhs_aligned, g)
        if cand > best:
            best = cand
    return best[2]


def _pick_rows(rows_total, in_row_bytes, out_row_bytes, acc_row_bytes, wb_bytes, sub):
    """Image rows (of W input pixels each) handled per grid step.

    Sized for ~_OUT_BLOCK_TARGET output bytes per block, capped by a VMEM budget
    that accounts for the 2x double buffering of both the x and out blocks, the
    (double-buffered) packed weight and the f32 matmul intermediate, and capped
    so the grid keeps >= 2 (>= 4 for large problems) steps so the ("parallel",)
    axis can shard across v7x's two TensorCores.
    """
    if rows_total <= sub:
        return rows_total
    budget = max(1 << 20, _VMEM_LIMIT - 6 * 1024 * 1024 - 2 * wb_bytes)
    per_row = 2 * (in_row_bytes + out_row_bytes) + 2 * acc_row_bytes
    r_mem = max(1, budget // per_row)
    r_tgt = max(sub, _OUT_BLOCK_TARGET // out_row_bytes)
    min_steps = 2
    if rows_total >= 4 * sub and (rows_total // 4) * out_row_bytes >= (1 << 20):
        min_steps = 4
    r_steps = max(sub, ((-(-rows_total // min_steps)) // sub) * sub)
    r = min(r_mem, r_tgt, r_steps)
    r = max(sub, (r // sub) * sub)
    # TODO(synk): add a column-tiling grid axis for shapes where even r == sub
    # exceeds the VMEM budget (extremely large 4*W*C_out rows).
    if r >= rows_total:
        return rows_total
    return r


def _make_kernel(kg, half, n_groups, row_half):
    """kg = G*C_in, half = G*2*C_out, row_half = 2*W*C_out (lane offset of di=1)."""
    aligned = (kg % 128 == 0) and (half % 128 == 0)
    use_loop = n_groups > 8 and aligned

    def kernel(x_ref, wb_ref, o_ref):
        # Packed operand: rows [0, kg) = block-diag weights for (di=0 | di=1),
        # row kg = tiled bias. Columns ordered (di, j_local, dj, c_out).
        wmat = wb_ref[:kg, :]            # (kg, 2*half)
        brow = wb_ref[kg:, :]            # (1,  2*half)

        if n_groups == 1:
            # G == W: the matmul result IS the full output row (di, j, dj, co)
            # -> a single full-width, offset-0, lane-dense store per block row.
            acc = jnp.dot(x_ref[...], wmat, preferred_element_type=jnp.float32)
            o_ref[...] = (acc + brow).astype(o_ref.dtype)
        elif not use_loop:
            # Few groups: static unroll (slices are static; kg/half chosen
            # 128-aligned whenever the shape allows).
            for jg in range(n_groups):
                xg = x_ref[:, jg * kg:(jg + 1) * kg]
                acc = jnp.dot(xg, wmat, preferred_element_type=jnp.float32) + brow
                acc = acc.astype(o_ref.dtype)
                lo = jg * half
                o_ref[:, lo:lo + half] = acc[:, :half]
                o_ref[:, row_half + lo:row_half + lo + half] = acc[:, half:]
        else:
            # Many groups: fori_loop bounds the live ranges (a static Python
            # unroll would keep every (R, 2*half) acc slab live and spill).
            # Dynamic slices are 128-lane aligned by construction (`aligned`).
            def body(jg, carry):
                xi = pl.multiple_of(jg * kg, 128)
                xg = x_ref[:, pl.ds(xi, kg)]
                acc = jnp.dot(xg, wmat, preferred_element_type=jnp.float32) + brow
                acc = acc.astype(o_ref.dtype)
                lo = pl.multiple_of(jg * half, 128)
                o_ref[:, pl.ds(lo, half)] = acc[:, :half]
                o_ref[:, pl.ds(row_half + lo, half)] = acc[:, half:]
                return carry

            lax.fori_loop(0, n_groups, body, 0, unroll=2)

    return kernel


def _pack_params(weight, bias, G):
    """Packed (G*C_in + 1, G*4*C_out) operand: block-diagonal per-subpixel
    weights (di=0 | di=1 halves side by side) with the bias tiled as the last
    row. Called once at init (hoisted out of the per-call path)."""
    c_in, c_out = weight.shape[0], weight.shape[1]
    # w_di[ci, dj*C_out + co] = weight[ci, co, di, dj]
    w0 = jnp.transpose(weight[:, :, 0, :], (0, 2, 1)).reshape(c_in, 2 * c_out)
    w1 = jnp.transpose(weight[:, :, 1, :], (0, 2, 1)).reshape(c_in, 2 * c_out)
    eye = jnp.eye(G, dtype=weight.dtype)
    wcat = jnp.concatenate([jnp.kron(eye, w0), jnp.kron(eye, w1)], axis=1)
    bcat = jnp.tile(bias, 4 * G)[None, :].astype(wcat.dtype)
    return jnp.concatenate([wcat, bcat], axis=0)     # (kg + 1, 2*half)


def make_upsample(weight, bias, spatial):
    """Build the Upsample forward for a fixed spatial size (H = W = spatial).

    weight: (C_in, C_out, 2, 2) ConvTranspose2d layout; bias: (C_out,).
    Packs the parameters once and returns a jitted forward
    (B, L, C_in) -> (B, 4L, C_out).
    """
    H = W = int(spatial)
    c_in, c_out = int(weight.shape[0]), int(weight.shape[1])
    itemsize = jnp.dtype(weight.dtype).itemsize

    G = _pick_group(W, c_in, c_out, itemsize)
    kg = G * c_in
    half = G * 2 * c_out
    n_groups = W // G
    row_half = 2 * W * c_out
    n_cols = 4 * W * c_out

    wb = _pack_params(weight, bias, G)               # packed once, concrete array
    wb_bytes = int(wb.size) * itemsize
    kernel = _make_kernel(kg, half, n_groups, row_half)

    def fwd(x):
        B, L, c = x.shape
        assert c == c_in and L == H * W, "input does not match packed parameters"
        dt = x.dtype
        dsize = jnp.dtype(dt).itemsize
        sub = 8 * max(1, 4 // dsize)                 # 8 f32 / 16 bf16 / 32 int8 sublanes
        rows_total = B * H

        in_row_bytes = dsize * _round_up(W * c_in, 128)
        out_row_bytes = dsize * _round_up(n_cols, 128)
        acc_row_bytes = 4 * _round_up(2 * half, 128)          # f32 matmul intermediate
        R = _pick_rows(rows_total, in_row_bytes, out_row_bytes, acc_row_bytes,
                       wb_bytes, sub)

        x2 = x.reshape(rows_total, W * c_in)          # rows = (b, i), lanes = (j, ci)
        wb_c = wb if wb.dtype == dt else wb.astype(dt)

        out2 = pl.pallas_call(
            kernel,
            out_shape=jax.ShapeDtypeStruct((rows_total, n_cols), dt),
            grid_spec=pltpu.PrefetchScalarGridSpec(
                num_scalar_prefetch=0,
                grid=(pl.cdiv(rows_total, R),),
                in_specs=[
                    pl.BlockSpec((R, W * c_in), lambda i: (i, 0)),
                    # Constant block index: the pipeline fetches wb once and
                    # skips re-DMA on later steps (index map never changes).
                    pl.BlockSpec((kg + 1, 2 * half), lambda i: (0, 0)),
                ],
                out_specs=pl.BlockSpec((R, n_cols), lambda i: (i, 0)),
            ),
            compiler_params=pltpu.CompilerParams(
                dimension_semantics=("parallel",),    # megacore sharding on v7x
                vmem_limit_bytes=_VMEM_LIMIT,
            ),
        )(x2, wb_c)

        # out2 row-major order is (b, i, di, j, dj, co) == token (2i+di)*2W + (2j+dj):
        # the final view is a metadata-only reshape (no second HBM pass).
        return out2.reshape(B, 4 * L, c_out)

    return jax.jit(fwd)


def _reference(x, weight, bias):
    """Pure-JAX reference of ConvTranspose2d(k=2, s=2) with the module's reshapes."""
    B, L, c_in = x.shape
    H = int(math.isqrt(L))
    c_out = weight.shape[1]
    xi = x.reshape(B, H, H, c_in).astype(jnp.float32)
    y = jnp.einsum("bhwc,coij->bhiwjo", xi, weight.astype(jnp.float32),
                   precision=jax.lax.Precision.HIGHEST)
    y = y + bias.astype(jnp.float32)
    return y.reshape(B, 4 * L, c_out).astype(x.dtype)


if __name__ == "__main__":
    key = jax.random.PRNGKey(0)
    B, H, W = 2, 16, 16
    in_channel, out_channel = 4, 8
    L = H * W

    kx, kw, kb = jax.random.split(key, 3)
    x = jax.random.normal(kx, (B, L, in_channel), dtype=jnp.float32)

    # Deterministic ConvTranspose2d params: weight (C_in, C_out, 2, 2), bias (C_out,)
    fan = in_channel * 2 * 2
    bound = 1.0 / math.sqrt(fan)
    weight = jax.random.uniform(kw, (in_channel, out_channel, 2, 2),
                                dtype=jnp.float32, minval=-bound, maxval=bound)
    bias = jax.random.uniform(kb, (out_channel,), dtype=jnp.float32,
                              minval=-bound, maxval=bound)

    fwd = make_upsample(weight, bias, spatial=H)      # params packed once here
    out = jax.block_until_ready(fwd(x))
    ref = jax.block_until_ready(_reference(x, weight, bias))

    assert out.shape == (B, 4 * L, out_channel)
    assert jnp.allclose(out, ref, atol=1e-5, rtol=1e-5), float(
        jnp.max(jnp.abs(out - ref)))

    print("KERNEL_OK")
</pallas_src>

<mosaic_0001>
module attributes {stable_mosaic.version = 11 : i64} {
  func.func @kernel(%arg0: i32, %arg1: memref<16x64xf32, #tpu.memory_space<vmem>>, %arg2: memref<65x512xf32, #tpu.memory_space<vmem>>, %arg3: memref<16x512xf32, #tpu.memory_space<vmem>>) attributes {dimension_semantics = [#tpu.dimension_semantics<parallel>], iteration_bounds = array<i64: 2>, scalar_prefetch = 0 : i64, scratch_operands = 0 : i64, tpu.core_type = #tpu.core_type<tc>, window_params = [{transform_indices = @transform_0, window_bounds = array<i64: 16, 64>}, {pipeline_mode = #tpu.pipeline_mode<synchronous>, transform_indices = @transform_1, window_bounds = array<i64: 65, 512>}, {transform_indices = @transform_2, window_bounds = array<i64: 16, 512>}]} {
    %c0 = arith.constant 0 : index
    %c0_0 = arith.constant 0 : index
    %0 = vector.load %arg2[%c0, %c0_0] : memref<65x512xf32, #tpu.memory_space<vmem>>, vector<64x512xf32>
    %c64 = arith.constant 64 : index
    %c0_1 = arith.constant 0 : index
    %1 = vector.load %arg2[%c64, %c0_1] : memref<65x512xf32, #tpu.memory_space<vmem>>, vector<1x512xf32>
    %c0_2 = arith.constant 0 : index
    %c0_3 = arith.constant 0 : index
    %2 = vector.load %arg1[%c0_2, %c0_3] : memref<16x64xf32, #tpu.memory_space<vmem>>, vector<16x64xf32>
    %cst = arith.constant dense<0.000000e+00> : vector<16x512xf32>
    %3 = tpu.matmul %2, %0, %cst {dimension_numbers = #tpu.dot_dimension_numbers<[1], [0], [0], [1], [0, 0, 1, 1], [], []>} : vector<16x64xf32>, vector<64x512xf32>, vector<16x512xf32> -> vector<16x512xf32>
    %4 = vector.broadcast %1 : vector<1x512xf32> to vector<16x512xf32>
    %5 = arith.addf %3, %4 : vector<16x512xf32>
    %c0_4 = arith.constant 0 : index
    %c0_5 = arith.constant 0 : index
    %6 = vector.load %arg3[%c0_4, %c0_5] : memref<16x512xf32, #tpu.memory_space<vmem>>, vector<16x512xf32>
    tpu.vector_store %arg3[%c0_4, %c0_5], %5 {strides = array<i32>} : memref<16x512xf32, #tpu.memory_space<vmem>>, vector<16x512xf32>,
    return
  }
  func.func @transform_0(%arg0: i32) -> (i32, i32) {
    %c0_i32 = arith.constant 0 : i32
    %c0_i32_0 = arith.constant 0 : i32
    return %arg0, %c0_i32 : i32, i32
  }
  func.func @transform_1(%arg0: i32) -> (i32, i32) {
    %c0_i32 = arith.constant 0 : i32
    %c0_i32_0 = arith.constant 0 : i32
    %c0_i32_1 = arith.constant 0 : i32
    return %c0_i32, %c0_i32_0 : i32, i32
  }
  func.func @transform_2(%arg0: i32) -> (i32, i32) {
    %c0_i32 = arith.constant 0 : i32
    %c0_i32_0 = arith.constant 0 : i32
    return %arg0, %c0_i32 : i32, i32
  }
}

</mosaic_0001>

<bundles_post_ra>
// kernel: fwd.1
= control target key start
LH: loop header
LB: loop body
LE: loop exit
PB: predicated region body
PF: predicated region fallthrough
CT: control target
= control target key end

     0   :  { %s516_s9 = smov 0   ;;  %s646_s0 = inlined_call_operand.vmem [shape: f32[32,64], index: 0, kind: input, shape index: {}]   ;;  %s647_s1 = inlined_call_operand.vmem [shape: f32[65,512], index: 1, kind: input, shape index: {}]   ;;  %s648_s2 = inlined_call_operand.vmem [shape: f32[32,512], index: 2, kind: output, shape index: {}]  }
   0x1 LB: > { %s433_s10 = sadd.s32 4294967295, %s498_s9   ;;  %p437_p0 = scmp.ge.s32.totalorder %s498_s9, 1  ;;  %s498_s9 = sphi %s516_s9, %s12_s9  }
   0x2   : > { %p113_p1 = scmp.lt.s32.totalorder %s498_s9, 3 }
   0x4   : > { %p114_p2 = pnand %p437_p0, %p113_p1 }
   0x5   : > { %v150_v0 = vld [vmem:[%s647_s1 + $0x8] sm:$0xff] (!%p114_p2)  ;;  %v152_v2 = vld [vmem:[%s647_s1 + $0x18] sm:$0xff] (!%p114_p2)  ;;  %s533_s17 = sshll.u32 (!%p114_p2), %s433_s10, 1  ;;  %v149_v5 = vld [vmem:[%s647_s1] sm:$0xff] (!%p114_p2)  ;;  %v500_v7 = vmov (!%p114_p2), 0.0   ;;  %vm206_vm0 = vcmask (!%p114_p2), 523264   ;;  %v186_v51 = vlaneseq (!%p114_p2) }
   0x6   : > { %117 = sbr.rel (%p114_p2) target bundleno = 246 (0xf6), region = 28  ;;  %v154_v1 = vld [vmem:[%s647_s1 + $0x28] sm:$0xff] (!%p114_p2)  ;;  %v156_v4 = vld [vmem:[%s647_s1 + $0x38] sm:$0xff] (!%p114_p2)  ;;  %v153_v6 = vld [vmem:[%s647_s1 + $0x20] sm:$0xff] (!%p114_p2)  ;;  %277 = vmatprep.mubr.f32.mxu0 (!%p114_p2), %v500_v7  ;;  %354 = vmatprep.mubr.f32.mxu1 (!%p114_p2), %v500_v7  ;;  %p137_p3 = scmp.lt.s32.totalorder (!%p114_p2), %s533_s17, 3 }
   0x7   : > { %v451_v3 = vpack.c.bf16 (!%p114_p2), %v154_v1, %v150_v0  ;;  %v467_v8 = vpack.c.bf16 (!%p114_p2), %v156_v4, %v152_v2  ;;  %v453_v9 = vpack.c.bf16 (!%p114_p2), %v153_v6, %v149_v5  ;;  %v151_v10 = vld [vmem:[%s647_s1 + $0x10] sm:$0xff] (!%p114_p2)  ;;  %v158_v12 = vld [vmem:[%s647_s1 + $0x48] sm:$0xff] (!%p114_p2)  ;;  %v160_v15 = vld [vmem:[%s647_s1 + $0x58] sm:$0xff] (!%p114_p2)  ;;  %v187_v52 = vshrl.u32 (!%p114_p2), %v186_v51, 7 }
   0x8   : > { %v155_v11 = vld [vmem:[%s647_s1 + $0x30] sm:$0xff] (!%p114_p2)  ;;  %v162_v14 = vld [vmem:[%s647_s1 + $0x68] sm:$0xff] (!%p114_p2)  ;;  %v164_v16 = vld [vmem:[%s647_s1 + $0x78] sm:$0xff] (!%p114_p2) }
   0x9   : > { %452 = vmatprep.subr.bf16.mxu0 (!%p114_p2), %v451_v3  ;;  %v469_v13 = vpack.c.bf16 (!%p114_p2), %v155_v11, %v151_v10  ;;  %468 = vmatprep.subr.bf16.mxu1 (!%p114_p2), %v467_v8  ;;  %v455_v17 = vpack.c.bf16 (!%p114_p2), %v162_v14, %v158_v12  ;;  %v471_v18 = vpack.c.bf16 (!%p114_p2), %v164_v16, %v160_v15  ;;  %v157_v19 = vld [vmem:[%s647_s1 + $0x40] sm:$0xff] (!%p114_p2)  ;;  %v159_v21 = vld [vmem:[%s647_s1 + $0x50] sm:$0xff] (!%p114_p2)  ;;  %v166_v24 = vld [vmem:[%s647_s1 + $0x88] sm:$0xff] (!%p114_p2)  ;;  %v188_v53 = vsub.s32 (!%p114_p2), 0, %v187_v52 }
   0xa   : > { %454 = vmatpush1.bf16.msra.mxu0 (!%p114_p2), %v453_v9  ;;  %v161_v20 = vld [vmem:[%s647_s1 + $0x60] sm:$0xff] (!%p114_p2)  ;;  %v163_v23 = vld [vmem:[%s647_s1 + $0x70] sm:$0xff] (!%p114_p2)  ;;  %v170_v25 = vld [vmem:[%s647_s1 + $0xa8] sm:$0xff] (!%p114_p2)  ;;  %v196_v55 = vsub.s32 (!%p114_p2), 2, %v187_v52  ;;  %v192_v56 = vsub.s32 (!%p114_p2), 1, %v187_v52  ;;  %v200_v57 = vsub.s32 (!%p114_p2), 3, %v187_v52 }
   0xb   : > { %470 = vmatpush1.bf16.msra.mxu1 (!%p114_p2), %v469_v13  ;;  %v457_v22 = vpack.c.bf16 (!%p114_p2), %v161_v20, %v157_v19  ;;  %456 = vmatprep.subr.bf16.mxu0 (!%p114_p2), %v455_v17  ;;  %v473_v26 = vpack.c.bf16 (!%p114_p2), %v163_v23, %v159_v21  ;;  %v459_v27 = vpack.c.bf16 (!%p114_p2), %v170_v25, %v166_v24  ;;  %v168_v28 = vld [vmem:[%s647_s1 + $0x98] sm:$0xff] (!%p114_p2)  ;;  %v165_v30 = vld [vmem:[%s647_s1 + $0x80] sm:$0xff] (!%p114_p2)  ;;  %v167_v33 = vld [vmem:[%s647_s1 + $0x90] sm:$0xff] (!%p114_p2) }
   0xc   : > { %472 = vmatprep.subr.bf16.mxu1 (!%p114_p2), %v471_v18  ;;  %v172_v29 = vld [vmem:[%s647_s1 + $0xb8] sm:$0xff] (!%p114_p2)  ;;  %v169_v32 = vld [vmem:[%s647_s1 + $0xa0] sm:$0xff] (!%p114_p2)  ;;  %v171_v34 = vld [vmem:[%s647_s1 + $0xb0] sm:$0xff] (!%p114_p2) }
   0xd   : > { %s650_s17 = smov (!%p137_p3, %s533_s17), 3  ;;  %v475_v31 = vpack.c.bf16 %v172_v29, %v168_v28  ;;  %v461_v35 = vpack.c.bf16 %v169_v32, %v165_v30  ;;  %v174_v36 = vld [vmem:[%s647_s1 + $0xc8] sm:$0xff]  ;;  %v176_v38 = vld [vmem:[%s647_s1 + $0xd8] sm:$0xff]  ;;  %v477_v39 = vpack.c.bf16 %v171_v34, %v167_v33  ;;  %v173_v42 = vld [vmem:[%s647_s1 + $0xc0] sm:$0xff] }
   0xe   : > { %458 = vmatpush1.bf16.msra.mxu0 %v457_v22  ;;  %v178_v37 = vld [vmem:[%s647_s1 + $0xe8] sm:$0xff]  ;;  %v180_v41 = vld [vmem:[%s647_s1 + $0xf8] sm:$0xff]  ;;  %v177_v43 = vld [vmem:[%s647_s1 + $0xe0] sm:$0xff]  ;;  %s439_s24 = sshll.u32 %s650_s17, 3  ;;  %s450_s30 = sshll.u32 %s650_s17, 5 }
   0xf   : > { %474 = vmatpush1.bf16.msra.mxu1 %v473_v26  ;;  %460 = vmatprep.subr.bf16.mxu0 %v459_v27  ;;  %v463_v40 = vpack.c.bf16 %v178_v37, %v174_v36  ;;  %v479_v44 = vpack.c.bf16 %v180_v41, %v176_v38  ;;  %v175_v45 = vld [vmem:[%s647_s1 + $0xd0] sm:$0xff]  ;;  %v465_v47 = vpack.c.bf16 %v177_v43, %v173_v42  ;;  %s140_s27 = scalar_lea.vmem %s646_s0, %s439_s24  ;;  %s147_s5 = scalar_lea.vmem %s648_s2, %s450_s30 }
  0x10   : > { %476 = vmatprep.subr.bf16.mxu1 %v475_v31  ;;  %v179_v46 = vld [vmem:[%s647_s1 + $0xf0] sm:$0xff]  ;;  %v183_v49 = vld [vmem:[%s140_s27] sm:$0xff]  ;;  %v184_v50 = vld [vmem:[%s140_s27 + $0x8] sm:$0xff] }
  0x11   : > { %v481_v48 = vpack.c.bf16 %v179_v46, %v175_v45  ;;  %v443_v54 = vld [vmem:[%s647_s1 + $0x100] ss:$8 sm:$0xf] }
  0x12   : > { %462 = vmatpush1.bf16.msra.mxu0 %v461_v35  ;;  %v189_v58 = vrot.slane %v443_v54, %v188_v53  ;;  %v197_v59 = vrot.slane %v443_v54, %v196_v55  ;;  %v193_v60 = vrot.slane %v443_v54, %v192_v56  ;;  %v201_v61 = vrot.slane %v443_v54, %v200_v57 }
  0x13   : > { %478 = vmatpush1.bf16.msra.mxu1 %v477_v39  ;;  %464 = vmatprep.subr.bf16.mxu0 %v463_v40 }
  0x14   : > { %480 = vmatprep.subr.bf16.mxu1 %v479_v44 }
  0x16   : > { %466 = vmatpush1.bf16.msra.mxu0 %v465_v47 }
  0x17   : > { %482 = vmatpush1.bf16.msra.mxu1 %v481_v48 }
  0x19   : > { %444 = vmatmul.mubr.msk.f32.vlgmr.msra.gmra.mrb[0].mxu0 %vm206_vm0, %v183_v49 }
  0x1a   : > { %446 = vmatmul.mubr.msk.f32.vlgmr.msra.gmra.mrb[0].mxu1 %vm206_vm0, %v183_v49  ;;  %283 = vmatprep.mubr.f32.mxu0 %v500_v7 }
  0x1b   : > { %360 = vmatprep.mubr.f32.mxu1 %v500_v7 }
  0x1d   : > { %445 = vmatmul.mubr.msk.f32.gmra.mrb[2].mxu0 %vm206_vm0, %v184_v50 }
  0x1e   : > { %447 = vmatmul.mubr.msk.f32.gmra.mrb[2].mxu1 %vm206_vm0, %v184_v50 }
  0xec   : > { %v279_v62 = vpop.f32.mrb[0].mxu0 }
  0xed   : > { %v280_v63 = vadd.f32 %v279_v62, %v189_v58  ;;  %v356_v0 = vpop.f32.mrb[0].mxu1  ;;  %v281_v1 = vpop.f32.mrb[1].mxu0 }
  0xee   : > { %v357_v2 = vadd.f32 %v356_v0, %v197_v59  ;;  %v282_v3 = vadd.f32 %v281_v1, %v193_v60  ;;  %v358_v4 = vpop.f32.mrb[1].mxu1 }
  0xef   : > { %367 = vst [vmem:[%s147_s5] sm:$0xff] %v280_v63  ;;  %v359_v5 = vadd.f32 %v358_v4, %v201_v61 }
  0xf0   : > { %369 = vst [vmem:[%s147_s5 + $0x10] sm:$0xff] %v357_v2  ;;  %368 = vst [vmem:[%s147_s5 + $0x8] sm:$0xff] %v282_v3  ;;  %v285_v6 = vpop.f32.mrb[2].mxu0 }
  0xf1   : > { %370 = vst [vmem:[%s147_s5 + $0x18] sm:$0xff] %v359_v5  ;;  %v286_v7 = vadd.f32 %v285_v6, %v189_v58  ;;  %v362_v8 = vpop.f32.mrb[2].mxu1  ;;  %v287_v9 = vpop.f32.mrb[3].mxu0 }
  0xf2   : > { %v363_v10 = vadd.f32 %v362_v8, %v197_v59  ;;  %v288_v11 = vadd.f32 %v287_v9, %v193_v60  ;;  %v364_v12 = vpop.f32.mrb[3].mxu1 }
  0xf3   : > { %371 = vst [vmem:[%s147_s5 + $0x20] sm:$0xff] %v286_v7  ;;  %v365_v13 = vadd.f32 %v364_v12, %v201_v61 }
  0xf4   : > { %373 = vst [vmem:[%s147_s5 + $0x30] sm:$0xff] %v363_v10  ;;  %372 = vst [vmem:[%s147_s5 + $0x28] sm:$0xff] %v288_v11 }
  0xf5   : > { %374 = vst [vmem:[%s147_s5 + $0x38] sm:$0xff] %v365_v13 }
  0xf6 PF: > { %s12_s9 = sadd.s32 1, %s498_s9  }
  0xf7   : > { %p9_p4 = scmp.ge.s32.totalorder %s12_s9, 4  }
  0xf9   :  { %11 = sbr.rel (!%p9_p4) target bundleno = 1 (0x1), region = 59 }

</bundles_post_ra>
